<compile_context>
chip_gen: v7x
topology: tpu7x:2x2x1
jax: 0.10.0
libtpu: 0.0.40
codegen_flags: <defaults>
</compile_context>

<pallas_src>
from functools import partial

import jax
import jax.numpy as jnp
from jax.experimental import pallas as pl
from jax.experimental.pallas import tpu as pltpu

_LN_EPS = 1e-5      # nn.LayerNorm default eps
_L2_EPS = 1e-12     # F.normalize default eps
_INV_SQRT2 = 0.7071067811865476


def _layernorm(x, gamma, beta):
    mean = jnp.mean(x, axis=-1, keepdims=True)
    var = jnp.mean((x - mean) ** 2, axis=-1, keepdims=True)   # biased var, like PyTorch
    return (x - mean) * jax.lax.rsqrt(var + _LN_EPS) * gamma + beta


# ---------------------------------------------------------------------------
# Kernel 1: norm1 + q/k/v linears + L2-normalize + channel attention + attn @ v.
# Processes `n_batch` batch elements' rows per grid step (M-packed linears); the per-batch
# softmax / attn@v runs in a bounded pl.loop over bf16 scratch slices.  The result is
# written transposed, (N, C) per batch, in bf16.
# ---------------------------------------------------------------------------
def _attn_kernel(x_ref, g1_ref, be1_ref, wq_ref, bq_ref, wk_ref, bk_ref, wv_ref, bv_ref,
                 out_ref, q_s, k_s, v_s, *, n_batch, n_ch, scale, sub_max):
    x = x_ref[...]                                               # (n_batch*C, N) f32
    h = _layernorm(x, g1_ref[...], be1_ref[...]).astype(jnp.bfloat16)   # norm1 (f32 stats)

    # Separate q/k weights (no lane-slicing of an MXU result); bf16 MXU, f32 accumulate.
    q = jnp.dot(h, wq_ref[...], preferred_element_type=jnp.float32) + bq_ref[...]
    k = jnp.dot(h, wk_ref[...], preferred_element_type=jnp.float32) + bk_ref[...]
    v = jnp.dot(h, wv_ref[...], preferred_element_type=jnp.float32) + bv_ref[...]

    # F.normalize(p=2): x * min(rsqrt(||x||^2), 1/eps) (EUP rsqrt); qk `scale` folded into q.
    q = q * (scale * jnp.minimum(jax.lax.rsqrt(jnp.sum(q * q, axis=-1, keepdims=True)),
                                 1.0 / _L2_EPS))
    k = k * jnp.minimum(jax.lax.rsqrt(jnp.sum(k * k, axis=-1, keepdims=True)), 1.0 / _L2_EPS)

    # Park bf16 copies in scratch: halves the live bytes and lets the loop slice refs.
    q_s[...] = q.astype(jnp.bfloat16)
    k_s[...] = k.astype(jnp.bfloat16)
    v_s[...] = v.astype(jnp.bfloat16)

    @pl.loop(0, n_batch)                                         # bounded live ranges
    def _(b):
        lo = b * n_ch
        if n_ch % 8 == 0:
            lo = pl.multiple_of(lo, 8)
        qb = q_s[pl.ds(lo, n_ch), :]                             # (C, N_) bf16
        kb = k_s[pl.ds(lo, n_ch), :]
        vb = v_s[pl.ds(lo, n_ch), :]
        # attn = (k @ q^T) * scale (scale already folded into q); softmax over last dim.
        logits = jax.lax.dot_general(kb, qb, (((1,), (1,)), ((), ())),
                                     preferred_element_type=jnp.float32)
        if sub_max:                                              # only for large user qk_scale
            logits = logits - jnp.max(logits, axis=-1, keepdims=True)
        attn = jnp.exp(logits)
        attn = attn * pl.reciprocal(jnp.sum(attn, axis=-1, keepdims=True), approx=True)
        # attn_drop is Dropout(0.0) -> identity at inference.
        # Emit (attn @ v)^T directly (contract the channel dim): shape (N, C), bf16 MXU.
        av_t = jax.lax.dot_general(vb, attn.astype(jnp.bfloat16), (((0,), (1,)), ((), ())),
                                   preferred_element_type=jnp.float32)
        out_ref[b] = av_t.astype(out_ref.dtype)


# ---------------------------------------------------------------------------
# Kernel 2: proj + residual1 + norm2 + MLP(GELU) + residual2, emitted already transposed.
# Grid: (batch tiles, hidden chunks).  proj/norm2 run once per row tile (j == 0), the MLP
# streams fc1/fc2 weight chunks into a resident f32 accumulator, and the last chunk writes
# the per-batch transpose straight into the (B, N, C) output (no trailing XLA transpose).
# ---------------------------------------------------------------------------
def _proj_mlp_kernel(y_ref, sc_ref, wp_ref, bp_ref, g2_ref, be2_ref,
                     w1_ref, b1h_ref, w2_ref, b2h_ref, out_ref, h2_s, acc_s,
                     *, n_batch, n_ch, approx_gelu):
    j = pl.program_id(1)

    @pl.when(j == 0)
    def _():
        p = jnp.dot(y_ref[...], wp_ref[...], preferred_element_type=jnp.float32) + bp_ref[...]
        x1 = sc_ref[...] + p                          # shortcut + drop_path(attn) (identity)
        h2_s[...] = _layernorm(x1, g2_ref[...], be2_ref[...]).astype(h2_s.dtype)
        acc_s[...] = x1 + b2h_ref[...]                # residual + fc2 bias; partials added below

    hid = jnp.dot(h2_s[...], w1_ref[...], preferred_element_type=jnp.float32) + b1h_ref[...]
    if approx_gelu:
        # tanh-approx GELU (EUP tanh) -- optional, slightly different numerics.
        hid = 0.5 * hid * (1.0 + jnp.tanh(0.7978845608028654 * (hid + 0.044715 * hid * hid * hid)))
    else:
        # Exact GELU (nn.GELU default).
        hid = 0.5 * hid * (1.0 + jax.lax.erf(hid * _INV_SQRT2))
    acc_s[...] += jnp.dot(hid.astype(jnp.bfloat16), w2_ref[...],
                          preferred_element_type=jnp.float32)

    @pl.when(j == pl.num_programs(1) - 1)
    def _():
        @pl.loop(0, n_batch)
        def _(b):
            lo = b * n_ch
            if n_ch % 8 == 0:
                lo = pl.multiple_of(lo, 8)
            # (C, N) -> (N, C) per batch in VMEM; the store goes straight to (B, N, C).
            out_ref[b] = jnp.transpose(acc_s[pl.ds(lo, n_ch), :]).astype(out_ref.dtype)


# ---------------------------------------------------------------------------
# Tiling helpers
# ---------------------------------------------------------------------------
def _vmem_capacity_bytes(default=64 * 2**20):
    try:
        info = pltpu.get_tpu_info()
        return int(getattr(info, "vmem_capacity_bytes", default))
    except Exception:
        return default


def _pick_row_pack(batch, channels, cap_rows=1024, min_steps=1):
    # Pack batch elements per grid step; the block's second-minor dim must be a multiple of 8
    # or the full extent.  Prefer packs that respect the row cap and leave >= min_steps grid
    # steps (feeds both v7x TensorCores); otherwise fall back to the smallest legal pack so we
    # never silently blow the VMEM budget.
    divs = [d for d in range(batch, 0, -1) if batch % d == 0]
    valid = [d for d in divs if (d * channels) % 8 == 0 or d == batch]
    if not valid:
        valid = [batch]                                   # full extent is always legal
    for d in valid:
        if d * channels <= cap_rows and batch // d >= min_steps:
            return d
    for d in valid:                                       # relax the min-steps requirement
        if d * channels <= cap_rows:
            return d
    return min(valid, key=lambda d: d * channels)         # smallest legal pack


def _pick_tile(n, cap, align):
    # Largest divisor of n that is <= cap and either `align`-aligned or the full extent.
    for d in range(min(n, cap), 0, -1):
        if n % d == 0 and (d == n or d % align == 0):
            return d
    return n


# ---------------------------------------------------------------------------
# One-time weight prep (hoisted out of the forward path): split qk, pre-transpose for
# (rows, in) @ (in, out) MXU dots, cast weights to bf16; biases / LN params stay f32.
# ---------------------------------------------------------------------------
def prepare_params(params, *, sequence, factor, weight_dtype=jnp.bfloat16):
    N = sequence
    N_ = int(N * factor)
    row = lambda v: jnp.asarray(v, jnp.float32).reshape(1, -1)
    wd = lambda w: jnp.asarray(w, jnp.float32).T.astype(weight_dtype)
    return {
        "g1": row(params["g1"]), "be1": row(params["be1"]),
        "wq_t": wd(params["w_qk"][:N_]), "bq": row(params["b_qk"][:N_]),
        "wk_t": wd(params["w_qk"][N_:]), "bk": row(params["b_qk"][N_:]),
        "wv_t": wd(params["w_v"]), "bv": row(params["b_v"]),
        "wp_t": wd(params["w_proj"]), "bp": row(params["b_proj"]),
        "g2": row(params["g2"]), "be2": row(params["be2"]),
        "w1_t": wd(params["w_fc1"]), "b1": row(params["b_fc1"]),
        "w2_t": wd(params["w_fc2"]), "b2": row(params["b_fc2"]),
    }


# ---------------------------------------------------------------------------
# Wrapper (forward pass of ChannelTransformerBlockV2)
# ---------------------------------------------------------------------------
def channel_transformer_block_v2(x, prep, *, input_resolution, factor,
                                 qk_scale=None, approx_gelu=False):
    H, W = input_resolution
    B, L, C = x.shape
    assert L == H * W, "input feature has wrong size"
    N = L                                                     # sequence
    N_ = int(N * factor)
    scale = float(qk_scale) if qk_scale is not None else float(N) ** (-0.5)
    hidden = prep["w1_t"].shape[1]
    # q/k rows are unit-norm, so logits are bounded by |scale|: skip the softmax max-subtract
    # unless a caller passes an unusually large qk_scale (static decision).
    sub_max = abs(scale) > 25.0

    # Hardware-aware budgets: v7x-like chips (64 MiB VMEM / 2 TCs) get smaller tiles, a lower
    # vmem limit, and parallel grid axes with >= 2 steps; 128-MiB chips get bigger tiles.
    vmem_cap = _vmem_capacity_bytes()
    small_vmem = vmem_cap <= 80 * 2**20
    vmem_limit = min((52 if small_vmem else 100) * 2**20, int(vmem_cap * 0.85))
    min_steps = 2 if (small_vmem and B >= 2) else 1

    x_cn = jnp.transpose(x, (0, 2, 1)).astype(jnp.float32)    # (B, C, N); also the shortcut
    x2d = x_cn.reshape(B * C, N)                              # free reshape

    # ---- Kernel 1: attention (grid packs `bb` batch elements of rows per step) ----
    bb = _pick_row_pack(B, C, cap_rows=512 if small_vmem else 1024, min_steps=min_steps)
    rows1 = bb * C
    c1 = lambda a: pl.BlockSpec(a.shape, lambda i: (0, 0), pipeline_mode=pl.Buffered(1))
    flops1 = 2 * B * C * N * (2 * N_ + N) + 2 * B * C * C * (N_ + N)
    bytes1 = 4 * B * C * N + 2 * N * (2 * N_ + N) + 2 * B * N * C

    attn_t = pl.pallas_call(
        partial(_attn_kernel, n_batch=bb, n_ch=C, scale=scale, sub_max=sub_max),
        out_shape=jax.ShapeDtypeStruct((B, N, C), jnp.bfloat16),
        grid=(B // bb,),
        in_specs=[pl.BlockSpec((rows1, N), lambda i: (i, 0)),
                  c1(prep["g1"]), c1(prep["be1"]),
                  c1(prep["wq_t"]), c1(prep["bq"]),
                  c1(prep["wk_t"]), c1(prep["bk"]),
                  c1(prep["wv_t"]), c1(prep["bv"])],
        out_specs=pl.BlockSpec((bb, N, C), lambda i: (i, 0, 0)),
        scratch_shapes=[pltpu.VMEM((rows1, N_), jnp.bfloat16),     # q (scaled, normalized)
                        pltpu.VMEM((rows1, N_), jnp.bfloat16),     # k (normalized)
                        pltpu.VMEM((rows1, N), jnp.bfloat16)],     # v
        compiler_params=pltpu.CompilerParams(
            dimension_semantics=("parallel",), vmem_limit_bytes=vmem_limit),
        cost_estimate=pl.CostEstimate(flops=int(flops1), transcendentals=int(B * C * C),
                                      bytes_accessed=int(bytes1)),
    )(x2d, prep["g1"], prep["be1"], prep["wq_t"], prep["bq"],
      prep["wk_t"], prep["bk"], prep["wv_t"], prep["bv"])

    # ChannelAttentionV2 quirk `(attn@v).transpose(1, 2).reshape(B, C, N)`: attn_t already
    # holds (attn@v)^T per batch, so the quirk is a free (contiguous) reshape here.
    # NOTE: this faithfully scrambles rows whenever C != N, exactly like the PyTorch code.
    y2d = attn_t.reshape(B * C, N)

    # ---- Kernel 2: proj + residual + norm2 + MLP (+ residual), batch-tiled, hidden-chunked ----
    bb2 = _pick_row_pack(B, C, cap_rows=256 if small_vmem else 512, min_steps=min_steps)
    rows2 = bb2 * C
    th = _pick_tile(hidden, 256 if small_vmem else 1024, 128)
    c2 = lambda a: pl.BlockSpec(a.shape, lambda i, j: (0, 0), pipeline_mode=pl.Buffered(1))
    R = B * C
    flops2 = 2 * R * N * N + 4 * R * N * hidden
    bytes2 = 6 * R * N + 2 * (N * N + 2 * N * hidden) * (B // bb2) + 4 * B * N * C

    out = pl.pallas_call(
        partial(_proj_mlp_kernel, n_batch=bb2, n_ch=C, approx_gelu=approx_gelu),
        out_shape=jax.ShapeDtypeStruct((B, N, C), jnp.float32),
        grid=(B // bb2, hidden // th),
        in_specs=[pl.BlockSpec((rows2, N), lambda i, j: (i, 0)),     # attention rows (bf16)
                  pl.BlockSpec((rows2, N), lambda i, j: (i, 0)),     # shortcut rows (f32)
                  c2(prep["wp_t"]), c2(prep["bp"]),
                  c2(prep["g2"]), c2(prep["be2"]),
                  pl.BlockSpec((N, th), lambda i, j: (0, j)),        # fc1 weight chunk
                  pl.BlockSpec((1, th), lambda i, j: (0, j)),        # fc1 bias chunk
                  pl.BlockSpec((th, N), lambda i, j: (j, 0)),        # fc2 weight chunk
                  c2(prep["b2"])],
        out_specs=pl.BlockSpec((bb2, N, C), lambda i, j: (i, 0, 0)),
        scratch_shapes=[pltpu.VMEM((rows2, N), jnp.bfloat16),        # norm2 activations
                        pltpu.VMEM((rows2, N), jnp.float32)],        # f32 accumulator
        compiler_params=pltpu.CompilerParams(
            dimension_semantics=("parallel", "arbitrary"), vmem_limit_bytes=vmem_limit),
        cost_estimate=pl.CostEstimate(flops=int(flops2), transcendentals=int(R * hidden),
                                      bytes_accessed=int(bytes2)),
    )(y2d, x2d, prep["wp_t"], prep["bp"], prep["g2"], prep["be2"],
      prep["w1_t"], prep["b1"], prep["w2_t"], prep["b2"])

    return out                                                # already (B, L, C): no XLA transpose


# ---------------------------------------------------------------------------
# Pure-JAX reference (mirrors the PyTorch forward 1:1, in f32)
# ---------------------------------------------------------------------------
def _reference(x, params, *, input_resolution, factor, qk_scale=None):
    B, L, C = x.shape
    N = L
    N_ = int(N * factor)
    scale = qk_scale if qk_scale is not None else N ** (-0.5)
    xc = jnp.transpose(x, (0, 2, 1))
    sc = xc
    h = _layernorm(xc, params["g1"], params["be1"])
    qk = h @ params["w_qk"].T + params["b_qk"]
    qk = qk.reshape(B, C, 2, N_).transpose(2, 0, 1, 3)
    q, k = qk[0], qk[1]
    v = h @ params["w_v"].T + params["b_v"]
    q = q / jnp.maximum(jnp.sqrt(jnp.sum(q * q, axis=-1, keepdims=True)), _L2_EPS)
    k = k / jnp.maximum(jnp.sqrt(jnp.sum(k * k, axis=-1, keepdims=True)), _L2_EPS)
    attn = jnp.einsum("bcn,bdn->bcd", k, q) * scale
    attn = jax.nn.softmax(attn, axis=-1)
    a = jnp.einsum("bcd,bdn->bcn", attn, v)
    a = jnp.transpose(a, (0, 2, 1)).reshape(B, C, N)
    a = a @ params["w_proj"].T + params["b_proj"]
    x1 = sc + a
    h2 = _layernorm(x1, params["g2"], params["be2"])
    m = h2 @ params["w_fc1"].T + params["b_fc1"]
    m = 0.5 * m * (1.0 + jax.lax.erf(m * _INV_SQRT2))
    m = m @ params["w_fc2"].T + params["b_fc2"]
    return jnp.transpose(x1 + m, (0, 2, 1))


if __name__ == "__main__":
    # Small shapes consistent with the module: sequence = H*W.
    B, H, W, C = 2, 4, 4, 8
    L = H * W
    N = L                        # sequence
    factor = 0.5
    N_ = int(N * factor)
    mlp_ratio = 4.0
    hidden = int(N * mlp_ratio)

    key = jax.random.PRNGKey(0)
    ks = jax.random.split(key, 12)
    init = lambda k, shape, s=0.05: (s * jax.random.normal(k, shape)).astype(jnp.float32)

    params = {
        "g1": jnp.ones((N,), jnp.float32), "be1": jnp.zeros((N,), jnp.float32),
        "w_qk": init(ks[0], (2 * N_, N)), "b_qk": init(ks[1], (2 * N_,)),
        "w_v": init(ks[2], (N, N)), "b_v": init(ks[3], (N,)),
        "w_proj": init(ks[4], (N, N)), "b_proj": init(ks[5], (N,)),
        "g2": jnp.ones((N,), jnp.float32), "be2": jnp.zeros((N,), jnp.float32),
        "w_fc1": init(ks[6], (hidden, N)), "b_fc1": init(ks[7], (hidden,)),
        "w_fc2": init(ks[8], (N, hidden)), "b_fc2": init(ks[9], (N,)),
    }
    # TODO(synk): Dropout / DropPath are rate 0.0 in this config -> identity (inference mode).

    x = jax.random.normal(ks[10], (B, L, C), jnp.float32)

    prep = prepare_params(params, sequence=N, factor=factor)       # one-time weight prep
    fwd = jax.jit(partial(channel_transformer_block_v2,
                          input_resolution=(H, W), factor=factor))
    out = jax.block_until_ready(fwd(x, prep))

    ref = _reference(x, params, input_resolution=(H, W), factor=factor)
    assert out.shape == (B, L, C)
    err = float(jnp.max(jnp.abs(out - ref)))
    assert jnp.allclose(out, ref, atol=2e-2, rtol=2e-2), err
    print("KERNEL_OK")
</pallas_src>

<mosaic_0001>
module attributes {stable_mosaic.version = 11 : i64} {
  func.func @_attn_kernel(%arg0: i32, %arg1: memref<8x16xf32, #tpu.memory_space<vmem>>, %arg2: memref<1x16xf32, #tpu.memory_space<vmem>>, %arg3: memref<1x16xf32, #tpu.memory_space<vmem>>, %arg4: memref<16x8xbf16, #tpu.memory_space<vmem>>, %arg5: memref<1x8xf32, #tpu.memory_space<vmem>>, %arg6: memref<16x8xbf16, #tpu.memory_space<vmem>>, %arg7: memref<1x8xf32, #tpu.memory_space<vmem>>, %arg8: memref<16x16xbf16, #tpu.memory_space<vmem>>, %arg9: memref<1x16xf32, #tpu.memory_space<vmem>>, %arg10: memref<1x16x8xbf16, #tpu.memory_space<vmem>>, %arg11: memref<8x8xbf16, #tpu.memory_space<vmem>>, %arg12: memref<8x8xbf16, #tpu.memory_space<vmem>>, %arg13: memref<8x16xbf16, #tpu.memory_space<vmem>>) attributes {dimension_semantics = [#tpu.dimension_semantics<parallel>], iteration_bounds = array<i64: 2>, scalar_prefetch = 0 : i64, scratch_operands = 3 : i64, tpu.core_type = #tpu.core_type<tc>, window_params = [{transform_indices = @transform_0, window_bounds = array<i64: 8, 16>}, {pipeline_mode = #tpu.pipeline_mode<synchronous>, transform_indices = @transform_1, window_bounds = array<i64: 1, 16>}, {pipeline_mode = #tpu.pipeline_mode<synchronous>, transform_indices = @transform_2, window_bounds = array<i64: 1, 16>}, {pipeline_mode = #tpu.pipeline_mode<synchronous>, transform_indices = @transform_3, window_bounds = array<i64: 16, 8>}, {pipeline_mode = #tpu.pipeline_mode<synchronous>, transform_indices = @transform_4, window_bounds = array<i64: 1, 8>}, {pipeline_mode = #tpu.pipeline_mode<synchronous>, transform_indices = @transform_5, window_bounds = array<i64: 16, 8>}, {pipeline_mode = #tpu.pipeline_mode<synchronous>, transform_indices = @transform_6, window_bounds = array<i64: 1, 8>}, {pipeline_mode = #tpu.pipeline_mode<synchronous>, transform_indices = @transform_7, window_bounds = array<i64: 16, 16>}, {pipeline_mode = #tpu.pipeline_mode<synchronous>, transform_indices = @transform_8, window_bounds = array<i64: 1, 16>}, {transform_indices = @transform_9, window_bounds = array<i64: 1, 16, 8>}]} {
    %c0 = arith.constant 0 : index
    %c0_0 = arith.constant 0 : index
    %0 = vector.load %arg1[%c0, %c0_0] : memref<8x16xf32, #tpu.memory_space<vmem>>, vector<8x16xf32>
    %c0_1 = arith.constant 0 : index
    %c0_2 = arith.constant 0 : index
    %1 = vector.load %arg2[%c0_1, %c0_2] : memref<1x16xf32, #tpu.memory_space<vmem>>, vector<1x16xf32>
    %c0_3 = arith.constant 0 : index
    %c0_4 = arith.constant 0 : index
    %2 = vector.load %arg3[%c0_3, %c0_4] : memref<1x16xf32, #tpu.memory_space<vmem>>, vector<1x16xf32>
    %cst = arith.constant dense<0.000000e+00> : vector<8xf32>
    %3 = vector.multi_reduction <add>, %0, %cst [1] : vector<8x16xf32> to vector<8xf32>
    %4 = vector.shape_cast %3 : vector<8xf32> to vector<8x1xf32>
    %cst_5 = arith.constant 1.600000e+01 : f32
    %5 = vector.broadcast %cst_5 : f32 to vector<8x1xf32>
    %6 = arith.divf %4, %5 : vector<8x1xf32>
    %7 = vector.broadcast %6 : vector<8x1xf32> to vector<8x16xf32>
    %8 = arith.subf %0, %7 : vector<8x16xf32>
    %9 = arith.mulf %8, %8 : vector<8x16xf32>
    %cst_6 = arith.constant dense<0.000000e+00> : vector<8xf32>
    %10 = vector.multi_reduction <add>, %9, %cst_6 [1] : vector<8x16xf32> to vector<8xf32>
    %11 = vector.shape_cast %10 : vector<8xf32> to vector<8x1xf32>
    %cst_7 = arith.constant 1.600000e+01 : f32
    %12 = vector.broadcast %cst_7 : f32 to vector<8x1xf32>
    %13 = arith.divf %11, %12 : vector<8x1xf32>
    %14 = vector.broadcast %6 : vector<8x1xf32> to vector<8x16xf32>
    %15 = arith.subf %0, %14 : vector<8x16xf32>
    %cst_8 = arith.constant 9.99999974E-6 : f32
    %16 = vector.broadcast %cst_8 : f32 to vector<8x1xf32>
    %17 = arith.addf %13, %16 : vector<8x1xf32>
    %18 = math.rsqrt %17 : vector<8x1xf32>
    %19 = vector.broadcast %18 : vector<8x1xf32> to vector<8x16xf32>
    %20 = arith.mulf %15, %19 : vector<8x16xf32>
    %21 = vector.broadcast %1 : vector<1x16xf32> to vector<8x16xf32>
    %22 = arith.mulf %20, %21 : vector<8x16xf32>
    %23 = vector.broadcast %2 : vector<1x16xf32> to vector<8x16xf32>
    %24 = arith.addf %22, %23 : vector<8x16xf32>
    %25 = arith.truncf %24 : vector<8x16xf32> to vector<8x16xbf16>
    %c0_9 = arith.constant 0 : index
    %c0_10 = arith.constant 0 : index
    %26 = vector.load %arg4[%c0_9, %c0_10] : memref<16x8xbf16, #tpu.memory_space<vmem>>, vector<16x8xbf16>
    %cst_11 = arith.constant dense<0.000000e+00> : vector<8x8xf32>
    %27 = tpu.matmul %25, %26, %cst_11 {dimension_numbers = #tpu.dot_dimension_numbers<[1], [0], [0], [1], [0, 0, 1, 1], [], []>} : vector<8x16xbf16>, vector<16x8xbf16>, vector<8x8xf32> -> vector<8x8xf32>
    %c0_12 = arith.constant 0 : index
    %c0_13 = arith.constant 0 : index
    %28 = vector.load %arg5[%c0_12, %c0_13] : memref<1x8xf32, #tpu.memory_space<vmem>>, vector<1x8xf32>
    %29 = vector.broadcast %28 : vector<1x8xf32> to vector<8x8xf32>
    %30 = arith.addf %27, %29 : vector<8x8xf32>
    %c0_14 = arith.constant 0 : index
    %c0_15 = arith.constant 0 : index
    %31 = vector.load %arg6[%c0_14, %c0_15] : memref<16x8xbf16, #tpu.memory_space<vmem>>, vector<16x8xbf16>
    %cst_16 = arith.constant dense<0.000000e+00> : vector<8x8xf32>
    %32 = tpu.matmul %25, %31, %cst_16 {dimension_numbers = #tpu.dot_dimension_numbers<[1], [0], [0], [1], [0, 0, 1, 1], [], []>} : vector<8x16xbf16>, vector<16x8xbf16>, vector<8x8xf32> -> vector<8x8xf32>
    %c0_17 = arith.constant 0 : index
    %c0_18 = arith.constant 0 : index
    %33 = vector.load %arg7[%c0_17, %c0_18] : memref<1x8xf32, #tpu.memory_space<vmem>>, vector<1x8xf32>
    %34 = vector.broadcast %33 : vector<1x8xf32> to vector<8x8xf32>
    %35 = arith.addf %32, %34 : vector<8x8xf32>
    %c0_19 = arith.constant 0 : index
    %c0_20 = arith.constant 0 : index
    %36 = vector.load %arg8[%c0_19, %c0_20] : memref<16x16xbf16, #tpu.memory_space<vmem>>, vector<16x16xbf16>
    %cst_21 = arith.constant dense<0.000000e+00> : vector<8x16xf32>
    %37 = tpu.matmul %25, %36, %cst_21 {dimension_numbers = #tpu.dot_dimension_numbers<[1], [0], [0], [1], [0, 0, 1, 1], [], []>} : vector<8x16xbf16>, vector<16x16xbf16>, vector<8x16xf32> -> vector<8x16xf32>
    %c0_22 = arith.constant 0 : index
    %c0_23 = arith.constant 0 : index
    %38 = vector.load %arg9[%c0_22, %c0_23] : memref<1x16xf32, #tpu.memory_space<vmem>>, vector<1x16xf32>
    %39 = vector.broadcast %38 : vector<1x16xf32> to vector<8x16xf32>
    %40 = arith.addf %37, %39 : vector<8x16xf32>
    %41 = arith.mulf %30, %30 : vector<8x8xf32>
    %cst_24 = arith.constant dense<0.000000e+00> : vector<8xf32>
    %42 = vector.multi_reduction <add>, %41, %cst_24 [1] : vector<8x8xf32> to vector<8xf32>
    %43 = vector.shape_cast %42 : vector<8xf32> to vector<8x1xf32>
    %44 = math.rsqrt %43 : vector<8x1xf32>
    %cst_25 = arith.constant 9.99999995E+11 : f32
    %45 = vector.broadcast %cst_25 : f32 to vector<8x1xf32>
    %46 = arith.minimumf %44, %45 : vector<8x1xf32>
    %cst_26 = arith.constant 2.500000e-01 : f32
    %47 = vector.broadcast %cst_26 : f32 to vector<8x1xf32>
    %48 = arith.mulf %47, %46 : vector<8x1xf32>
    %49 = vector.broadcast %48 : vector<8x1xf32> to vector<8x8xf32>
    %50 = arith.mulf %30, %49 : vector<8x8xf32>
    %51 = arith.mulf %35, %35 : vector<8x8xf32>
    %cst_27 = arith.constant dense<0.000000e+00> : vector<8xf32>
    %52 = vector.multi_reduction <add>, %51, %cst_27 [1] : vector<8x8xf32> to vector<8xf32>
    %53 = vector.shape_cast %52 : vector<8xf32> to vector<8x1xf32>
    %54 = math.rsqrt %53 : vector<8x1xf32>
    %cst_28 = arith.constant 9.99999995E+11 : f32
    %55 = vector.broadcast %cst_28 : f32 to vector<8x1xf32>
    %56 = arith.minimumf %54, %55 : vector<8x1xf32>
    %57 = vector.broadcast %56 : vector<8x1xf32> to vector<8x8xf32>
    %58 = arith.mulf %35, %57 : vector<8x8xf32>
    %59 = arith.truncf %50 : vector<8x8xf32> to vector<8x8xbf16>
    %c0_29 = arith.constant 0 : index
    %c0_30 = arith.constant 0 : index
    %60 = vector.load %arg11[%c0_29, %c0_30] : memref<8x8xbf16, #tpu.memory_space<vmem>>, vector<8x8xbf16>
    tpu.vector_store %arg11[%c0_29, %c0_30], %59 {strides = array<i32>} : memref<8x8xbf16, #tpu.memory_space<vmem>>, vector<8x8xbf16>,
    %61 = arith.truncf %58 : vector<8x8xf32> to vector<8x8xbf16>
    %c0_31 = arith.constant 0 : index
    %c0_32 = arith.constant 0 : index
    %62 = vector.load %arg12[%c0_31, %c0_32] : memref<8x8xbf16, #tpu.memory_space<vmem>>, vector<8x8xbf16>
    tpu.vector_store %arg12[%c0_31, %c0_32], %61 {strides = array<i32>} : memref<8x8xbf16, #tpu.memory_space<vmem>>, vector<8x8xbf16>,
    %63 = arith.truncf %40 : vector<8x16xf32> to vector<8x16xbf16>
    %c0_33 = arith.constant 0 : index
    %c0_34 = arith.constant 0 : index
    %64 = vector.load %arg13[%c0_33, %c0_34] : memref<8x16xbf16, #tpu.memory_space<vmem>>, vector<8x16xbf16>
    tpu.vector_store %arg13[%c0_33, %c0_34], %63 {strides = array<i32>} : memref<8x16xbf16, #tpu.memory_space<vmem>>, vector<8x16xbf16>,
    %c0_i32 = arith.constant 0 : i32
    %c1_i32 = arith.constant 1 : i32
    %65 = arith.muli %c0_i32, %c1_i32 : i32
    %c0_i32_35 = arith.constant 0 : i32
    %66 = arith.addi %c0_i32_35, %65 : i32
    %c8_i32 = arith.constant 8 : i32
    %67 = arith.muli %66, %c8_i32 : i32
    %68 = tpu.assume_multiple %67, 8 : i32
    %69 = arith.index_cast %68 : i32 to index
    %c0_36 = arith.constant 0 : index
    %70 = vector.load %arg11[%69, %c0_36] : memref<8x8xbf16, #tpu.memory_space<vmem>>, vector<8x8xbf16>
    %71 = arith.index_cast %68 : i32 to index
    %c0_37 = arith.constant 0 : index
    %72 = vector.load %arg12[%71, %c0_37] : memref<8x8xbf16, #tpu.memory_space<vmem>>, vector<8x8xbf16>
    %73 = arith.index_cast %68 : i32 to index
    %c0_38 = arith.constant 0 : index
    %74 = vector.load %arg13[%73, %c0_38] : memref<8x16xbf16, #tpu.memory_space<vmem>>, vector<8x16xbf16>
    %cst_39 = arith.constant dense<0.000000e+00> : vector<8x8xf32>
    %75 = tpu.matmul %72, %70, %cst_39 {dimension_numbers = #tpu.dot_dimension_numbers<[1], [1], [0], [0], [0, 0, 1, 0], [], []>} : vector<8x8xbf16>, vector<8x8xbf16>, vector<8x8xf32> -> vector<8x8xf32>
    %76 = math.exp %75 : vector<8x8xf32>
    %cst_40 = arith.constant dense<0.000000e+00> : vector<8xf32>
    %77 = vector.multi_reduction <add>, %76, %cst_40 [1] : vector<8x8xf32> to vector<8xf32>
    %78 = vector.shape_cast %77 : vector<8xf32> to vector<8x1xf32>
    %79 = tpu.reciprocal %78 {approx = true} : vector<8x1xf32> -> vector<8x1xf32>
    %80 = vector.broadcast %79 : vector<8x1xf32> to vector<8x8xf32>
    %81 = arith.mulf %76, %80 : vector<8x8xf32>
    %82 = arith.truncf %81 : vector<8x8xf32> to vector<8x8xbf16>
    %cst_41 = arith.constant dense<0.000000e+00> : vector<16x8xf32>
    %83 = tpu.matmul %74, %82, %cst_41 {dimension_numbers = #tpu.dot_dimension_numbers<[0], [1], [1], [0], [0, 1, 1, 0], [], []>} : vector<8x16xbf16>, vector<8x8xbf16>, vector<16x8xf32> -> vector<16x8xf32>
    %84 = arith.truncf %83 : vector<16x8xf32> to vector<16x8xbf16>
    %85 = arith.index_cast %66 : i32 to index
    %c0_42 = arith.constant 0 : index
    %c0_43 = arith.constant 0 : index
    %86 = vector.load %arg10[%85, %c0_42, %c0_43] : memref<1x16x8xbf16, #tpu.memory_space<vmem>>, vector<1x16x8xbf16>
    %87 = vector.shape_cast %86 : vector<1x16x8xbf16> to vector<16x8xbf16>
    %88 = vector.shape_cast %84 : vector<16x8xbf16> to vector<1x16x8xbf16>
    tpu.vector_store %arg10[%85, %c0_42, %c0_43], %88 {strides = array<i32>} : memref<1x16x8xbf16, #tpu.memory_space<vmem>>, vector<1x16x8xbf16>,
    %c1_i32_44 = arith.constant 1 : i32
    return
  }
  func.func @transform_0(%arg0: i32) -> (i32, i32) {
    %c0_i32 = arith.constant 0 : i32
    %c0_i32_0 = arith.constant 0 : i32
    return %arg0, %c0_i32 : i32, i32
  }
  func.func @transform_1(%arg0: i32) -> (i32, i32) {
    %c0_i32 = arith.constant 0 : i32
    %c0_i32_0 = arith.constant 0 : i32
    %c0_i32_1 = arith.constant 0 : i32
    return %c0_i32, %c0_i32_0 : i32, i32
  }
  func.func @transform_2(%arg0: i32) -> (i32, i32) {
    %c0_i32 = arith.constant 0 : i32
    %c0_i32_0 = arith.constant 0 : i32
    %c0_i32_1 = arith.constant 0 : i32
    return %c0_i32, %c0_i32_0 : i32, i32
  }
  func.func @transform_3(%arg0: i32) -> (i32, i32) {
    %c0_i32 = arith.constant 0 : i32
    %c0_i32_0 = arith.constant 0 : i32
    %c0_i32_1 = arith.constant 0 : i32
    return %c0_i32, %c0_i32_0 : i32, i32
  }
  func.func @transform_4(%arg0: i32) -> (i32, i32) {
    %c0_i32 = arith.constant 0 : i32
    %c0_i32_0 = arith.constant 0 : i32
    %c0_i32_1 = arith.constant 0 : i32
    return %c0_i32, %c0_i32_0 : i32, i32
  }
  func.func @transform_5(%arg0: i32) -> (i32, i32) {
    %c0_i32 = arith.constant 0 : i32
    %c0_i32_0 = arith.constant 0 : i32
    %c0_i32_1 = arith.constant 0 : i32
    return %c0_i32, %c0_i32_0 : i32, i32
  }
  func.func @transform_6(%arg0: i32) -> (i32, i32) {
    %c0_i32 = arith.constant 0 : i32
    %c0_i32_0 = arith.constant 0 : i32
    %c0_i32_1 = arith.constant 0 : i32
    return %c0_i32, %c0_i32_0 : i32, i32
  }
  func.func @transform_7(%arg0: i32) -> (i32, i32) {
    %c0_i32 = arith.constant 0 : i32
    %c0_i32_0 = arith.constant 0 : i32
    %c0_i32_1 = arith.constant 0 : i32
    return %c0_i32, %c0_i32_0 : i32, i32
  }
  func.func @transform_8(%arg0: i32) -> (i32, i32) {
    %c0_i32 = arith.constant 0 : i32
    %c0_i32_0 = arith.constant 0 : i32
    %c0_i32_1 = arith.constant 0 : i32
    return %c0_i32, %c0_i32_0 : i32, i32
  }
  func.func @transform_9(%arg0: i32) -> (i32, i32, i32) {
    %c0_i32 = arith.constant 0 : i32
    %c0_i32_0 = arith.constant 0 : i32
    %c0_i32_1 = arith.constant 0 : i32
    return %arg0, %c0_i32, %c0_i32_0 : i32, i32, i32
  }
}

module attributes {stable_mosaic.version = 11 : i64} {
  func.func @_proj_mlp_kernel(%arg0: i32, %arg1: i32, %arg2: memref<8x16xbf16, #tpu.memory_space<vmem>>, %arg3: memref<8x16xf32, #tpu.memory_space<vmem>>, %arg4: memref<16x16xbf16, #tpu.memory_space<vmem>>, %arg5: memref<1x16xf32, #tpu.memory_space<vmem>>, %arg6: memref<1x16xf32, #tpu.memory_space<vmem>>, %arg7: memref<1x16xf32, #tpu.memory_space<vmem>>, %arg8: memref<16x64xbf16, #tpu.memory_space<vmem>>, %arg9: memref<1x64xf32, #tpu.memory_space<vmem>>, %arg10: memref<64x16xbf16, #tpu.memory_space<vmem>>, %arg11: memref<1x16xf32, #tpu.memory_space<vmem>>, %arg12: memref<1x16x8xf32, #tpu.memory_space<vmem>>, %arg13: memref<8x16xbf16, #tpu.memory_space<vmem>>, %arg14: memref<8x16xf32, #tpu.memory_space<vmem>>) attributes {dimension_semantics = [#tpu.dimension_semantics<parallel>, #tpu.dimension_semantics<arbitrary>], iteration_bounds = array<i64: 2, 1>, scalar_prefetch = 0 : i64, scratch_operands = 2 : i64, tpu.core_type = #tpu.core_type<tc>, window_params = [{transform_indices = @transform_0, window_bounds = array<i64: 8, 16>}, {transform_indices = @transform_1, window_bounds = array<i64: 8, 16>}, {pipeline_mode = #tpu.pipeline_mode<synchronous>, transform_indices = @transform_2, window_bounds = array<i64: 16, 16>}, {pipeline_mode = #tpu.pipeline_mode<synchronous>, transform_indices = @transform_3, window_bounds = array<i64: 1, 16>}, {pipeline_mode = #tpu.pipeline_mode<synchronous>, transform_indices = @transform_4, window_bounds = array<i64: 1, 16>}, {pipeline_mode = #tpu.pipeline_mode<synchronous>, transform_indices = @transform_5, window_bounds = array<i64: 1, 16>}, {transform_indices = @transform_6, window_bounds = array<i64: 16, 64>}, {transform_indices = @transform_7, window_bounds = array<i64: 1, 64>}, {transform_indices = @transform_8, window_bounds = array<i64: 64, 16>}, {pipeline_mode = #tpu.pipeline_mode<synchronous>, transform_indices = @transform_9, window_bounds = array<i64: 1, 16>}, {transform_indices = @transform_10, window_bounds = array<i64: 1, 16, 8>}]} {
    %c0_i32 = arith.constant 0 : i32
    %0 = arith.cmpi eq, %arg1, %c0_i32 : i32
    %1 = arith.extui %0 : i1 to i32
    %c0_i32_0 = arith.constant 0 : i32
    %2 = arith.cmpi ne, %1, %c0_i32_0 : i32
    scf.if %2 {
      %c0_18 = arith.constant 0 : index
      %c0_19 = arith.constant 0 : index
      %26 = vector.load %arg2[%c0_18, %c0_19] : memref<8x16xbf16, #tpu.memory_space<vmem>>, vector<8x16xbf16>
      %c0_20 = arith.constant 0 : index
      %c0_21 = arith.constant 0 : index
      %27 = vector.load %arg4[%c0_20, %c0_21] : memref<16x16xbf16, #tpu.memory_space<vmem>>, vector<16x16xbf16>
      %cst_22 = arith.constant dense<0.000000e+00> : vector<8x16xf32>
      %28 = tpu.matmul %26, %27, %cst_22 {dimension_numbers = #tpu.dot_dimension_numbers<[1], [0], [0], [1], [0, 0, 1, 1], [], []>} : vector<8x16xbf16>, vector<16x16xbf16>, vector<8x16xf32> -> vector<8x16xf32>
      %c0_23 = arith.constant 0 : index
      %c0_24 = arith.constant 0 : index
      %29 = vector.load %arg5[%c0_23, %c0_24] : memref<1x16xf32, #tpu.memory_space<vmem>>, vector<1x16xf32>
      %30 = vector.broadcast %29 : vector<1x16xf32> to vector<8x16xf32>
      %31 = arith.addf %28, %30 : vector<8x16xf32>
      %c0_25 = arith.constant 0 : index
      %c0_26 = arith.constant 0 : index
      %32 = vector.load %arg3[%c0_25, %c0_26] : memref<8x16xf32, #tpu.memory_space<vmem>>, vector<8x16xf32>
      %33 = arith.addf %32, %31 : vector<8x16xf32>
      %c0_27 = arith.constant 0 : index
      %c0_28 = arith.constant 0 : index
      %34 = vector.load %arg6[%c0_27, %c0_28] : memref<1x16xf32, #tpu.memory_space<vmem>>, vector<1x16xf32>
      %c0_29 = arith.constant 0 : index
      %c0_30 = arith.constant 0 : index
      %35 = vector.load %arg7[%c0_29, %c0_30] : memref<1x16xf32, #tpu.memory_space<vmem>>, vector<1x16xf32>
      %cst_31 = arith.constant dense<0.000000e+00> : vector<8xf32>
      %36 = vector.multi_reduction <add>, %33, %cst_31 [1] : vector<8x16xf32> to vector<8xf32>
      %37 = vector.shape_cast %36 : vector<8xf32> to vector<8x1xf32>
      %cst_32 = arith.constant 1.600000e+01 : f32
      %38 = vector.broadcast %cst_32 : f32 to vector<8x1xf32>
      %39 = arith.divf %37, %38 : vector<8x1xf32>
      %40 = vector.broadcast %39 : vector<8x1xf32> to vector<8x16xf32>
      %41 = arith.subf %33, %40 : vector<8x16xf32>
      %42 = arith.mulf %41, %41 : vector<8x16xf32>
      %cst_33 = arith.constant dense<0.000000e+00> : vector<8xf32>
      %43 = vector.multi_reduction <add>, %42, %cst_33 [1] : vector<8x16xf32> to vector<8xf32>
      %44 = vector.shape_cast %43 : vector<8xf32> to vector<8x1xf32>
      %cst_34 = arith.constant 1.600000e+01 : f32
      %45 = vector.broadcast %cst_34 : f32 to vector<8x1xf32>
      %46 = arith.divf %44, %45 : vector<8x1xf32>
      %47 = vector.broadcast %39 : vector<8x1xf32> to vector<8x16xf32>
      %48 = arith.subf %33, %47 : vector<8x16xf32>
      %cst_35 = arith.constant 9.99999974E-6 : f32
      %49 = vector.broadcast %cst_35 : f32 to vector<8x1xf32>
      %50 = arith.addf %46, %49 : vector<8x1xf32>
      %51 = math.rsqrt %50 : vector<8x1xf32>
      %52 = vector.broadcast %51 : vector<8x1xf32> to vector<8x16xf32>
      %53 = arith.mulf %48, %52 : vector<8x16xf32>
      %54 = vector.broadcast %34 : vector<1x16xf32> to vector<8x16xf32>
      %55 = arith.mulf %53, %54 : vector<8x16xf32>
      %56 = vector.broadcast %35 : vector<1x16xf32> to vector<8x16xf32>
      %57 = arith.addf %55, %56 : vector<8x16xf32>
      %58 = arith.truncf %57 : vector<8x16xf32> to vector<8x16xbf16>
      %c0_36 = arith.constant 0 : index
      %c0_37 = arith.constant 0 : index
      %59 = vector.load %arg13[%c0_36, %c0_37] : memref<8x16xbf16, #tpu.memory_space<vmem>>, vector<8x16xbf16>
      tpu.vector_store %arg13[%c0_36, %c0_37], %58 {strides = array<i32>} : memref<8x16xbf16, #tpu.memory_space<vmem>>, vector<8x16xbf16>,
      %c0_38 = arith.constant 0 : index
      %c0_39 = arith.constant 0 : index
      %60 = vector.load %arg11[%c0_38, %c0_39] : memref<1x16xf32, #tpu.memory_space<vmem>>, vector<1x16xf32>
      %61 = vector.broadcast %60 : vector<1x16xf32> to vector<8x16xf32>
      %62 = arith.addf %33, %61 : vector<8x16xf32>
      %c0_40 = arith.constant 0 : index
      %c0_41 = arith.constant 0 : index
      %63 = vector.load %arg14[%c0_40, %c0_41] : memref<8x16xf32, #tpu.memory_space<vmem>>, vector<8x16xf32>
      tpu.vector_store %arg14[%c0_40, %c0_41], %62 {strides = array<i32>} : memref<8x16xf32, #tpu.memory_space<vmem>>, vector<8x16xf32>,
    } else {
    }
    %c0 = arith.constant 0 : index
    %c0_1 = arith.constant 0 : index
    %3 = vector.load %arg13[%c0, %c0_1] : memref<8x16xbf16, #tpu.memory_space<vmem>>, vector<8x16xbf16>
    %c0_2 = arith.constant 0 : index
    %c0_3 = arith.constant 0 : index
    %4 = vector.load %arg8[%c0_2, %c0_3] : memref<16x64xbf16, #tpu.memory_space<vmem>>, vector<16x64xbf16>
    %cst = arith.constant dense<0.000000e+00> : vector<8x64xf32>
    %5 = tpu.matmul %3, %4, %cst {dimension_numbers = #tpu.dot_dimension_numbers<[1], [0], [0], [1], [0, 0, 1, 1], [], []>} : vector<8x16xbf16>, vector<16x64xbf16>, vector<8x64xf32> -> vector<8x64xf32>
    %c0_4 = arith.constant 0 : index
    %c0_5 = arith.constant 0 : index
    %6 = vector.load %arg9[%c0_4, %c0_5] : memref<1x64xf32, #tpu.memory_space<vmem>>, vector<1x64xf32>
    %7 = vector.broadcast %6 : vector<1x64xf32> to vector<8x64xf32>
    %8 = arith.addf %5, %7 : vector<8x64xf32>
    %cst_6 = arith.constant 5.000000e-01 : f32
    %9 = vector.broadcast %cst_6 : f32 to vector<8x64xf32>
    %10 = arith.mulf %9, %8 : vector<8x64xf32>
    %cst_7 = arith.constant 0.707106769 : f32
    %11 = vector.broadcast %cst_7 : f32 to vector<8x64xf32>
    %12 = arith.mulf %8, %11 : vector<8x64xf32>
    %13 = math.erf %12 : vector<8x64xf32>
    %cst_8 = arith.constant 1.000000e+00 : f32
    %14 = vector.broadcast %cst_8 : f32 to vector<8x64xf32>
    %15 = arith.addf %14, %13 : vector<8x64xf32>
    %16 = arith.mulf %10, %15 : vector<8x64xf32>
    %c0_9 = arith.constant 0 : index
    %c0_10 = arith.constant 0 : index
    %17 = vector.load %arg14[%c0_9, %c0_10] : memref<8x16xf32, #tpu.memory_space<vmem>>, vector<8x16xf32>
    %18 = arith.truncf %16 : vector<8x64xf32> to vector<8x64xbf16>
    %c0_11 = arith.constant 0 : index
    %c0_12 = arith.constant 0 : index
    %19 = vector.load %arg10[%c0_11, %c0_12] : memref<64x16xbf16, #tpu.memory_space<vmem>>, vector<64x16xbf16>
    %cst_13 = arith.constant dense<0.000000e+00> : vector<8x16xf32>
    %20 = tpu.matmul %18, %19, %cst_13 {dimension_numbers = #tpu.dot_dimension_numbers<[1], [0], [0], [1], [0, 0, 1, 1], [], []>} : vector<8x64xbf16>, vector<64x16xbf16>, vector<8x16xf32> -> vector<8x16xf32>
    %21 = arith.addf %17, %20 : vector<8x16xf32>
    %c0_14 = arith.constant 0 : index
    %c0_15 = arith.constant 0 : index
    %22 = vector.load %arg14[%c0_14, %c0_15] : memref<8x16xf32, #tpu.memory_space<vmem>>, vector<8x16xf32>
    tpu.vector_store %arg14[%c0_14, %c0_15], %21 {strides = array<i32>} : memref<8x16xf32, #tpu.memory_space<vmem>>, vector<8x16xf32>,
    %c0_i32_16 = arith.constant 0 : i32
    %23 = arith.cmpi eq, %arg1, %c0_i32_16 : i32
    %24 = arith.extui %23 : i1 to i32
    %c0_i32_17 = arith.constant 0 : i32
    %25 = arith.cmpi ne, %24, %c0_i32_17 : i32
    scf.if %25 {
      %c0_i32_18 = arith.constant 0 : i32
      %c1_i32 = arith.constant 1 : i32
      %26 = arith.muli %c0_i32_18, %c1_i32 : i32
      %c0_i32_19 = arith.constant 0 : i32
      %27 = arith.addi %c0_i32_19, %26 : i32
      %c8_i32 = arith.constant 8 : i32
      %28 = arith.muli %27, %c8_i32 : i32
      %29 = tpu.assume_multiple %28, 8 : i32
      %30 = arith.index_cast %29 : i32 to index
      %c0_20 = arith.constant 0 : index
      %31 = vector.load %arg14[%30, %c0_20] : memref<8x16xf32, #tpu.memory_space<vmem>>, vector<8x16xf32>
      %32 = tpu.transpose %31, [1, 0] : vector<8x16xf32> -> vector<16x8xf32>
      %33 = arith.index_cast %27 : i32 to index
      %c0_21 = arith.constant 0 : index
      %c0_22 = arith.constant 0 : index
      %34 = vector.load %arg12[%33, %c0_21, %c0_22] : memref<1x16x8xf32, #tpu.memory_space<vmem>>, vector<1x16x8xf32>
      %35 = vector.shape_cast %34 : vector<1x16x8xf32> to vector<16x8xf32>
      %36 = vector.shape_cast %32 : vector<16x8xf32> to vector<1x16x8xf32>
      tpu.vector_store %arg12[%33, %c0_21, %c0_22], %36 {strides = array<i32>} : memref<1x16x8xf32, #tpu.memory_space<vmem>>, vector<1x16x8xf32>,
      %c1_i32_23 = arith.constant 1 : i32
    } else {
    }
    return
  }
  func.func @transform_0(%arg0: i32, %arg1: i32) -> (i32, i32) {
    %c0_i32 = arith.constant 0 : i32
    %c0_i32_0 = arith.constant 0 : i32
    return %arg0, %c0_i32 : i32, i32
  }
  func.func @transform_1(%arg0: i32, %arg1: i32) -> (i32, i32) {
    %c0_i32 = arith.constant 0 : i32
    %c0_i32_0 = arith.constant 0 : i32
    return %arg0, %c0_i32 : i32, i32
  }
  func.func @transform_2(%arg0: i32, %arg1: i32) -> (i32, i32) {
    %c0_i32 = arith.constant 0 : i32
    %c0_i32_0 = arith.constant 0 : i32
    %c0_i32_1 = arith.constant 0 : i32
    return %c0_i32, %c0_i32_0 : i32, i32
  }
  func.func @transform_3(%arg0: i32, %arg1: i32) -> (i32, i32) {
    %c0_i32 = arith.constant 0 : i32
    %c0_i32_0 = arith.constant 0 : i32
    %c0_i32_1 = arith.constant 0 : i32
    return %c0_i32, %c0_i32_0 : i32, i32
  }
  func.func @transform_4(%arg0: i32, %arg1: i32) -> (i32, i32) {
    %c0_i32 = arith.constant 0 : i32
    %c0_i32_0 = arith.constant 0 : i32
    %c0_i32_1 = arith.constant 0 : i32
    return %c0_i32, %c0_i32_0 : i32, i32
  }
  func.func @transform_5(%arg0: i32, %arg1: i32) -> (i32, i32) {
    %c0_i32 = arith.constant 0 : i32
    %c0_i32_0 = arith.constant 0 : i32
    %c0_i32_1 = arith.constant 0 : i32
    return %c0_i32, %c0_i32_0 : i32, i32
  }
  func.func @transform_6(%arg0: i32, %arg1: i32) -> (i32, i32) {
    %c0_i32 = arith.constant 0 : i32
    %c0_i32_0 = arith.constant 0 : i32
    return %c0_i32, %arg1 : i32, i32
  }
  func.func @transform_7(%arg0: i32, %arg1: i32) -> (i32, i32) {
    %c0_i32 = arith.constant 0 : i32
    %c0_i32_0 = arith.constant 0 : i32
    return %c0_i32, %arg1 : i32, i32
  }
  func.func @transform_8(%arg0: i32, %arg1: i32) -> (i32, i32) {
    %c0_i32 = arith.constant 0 : i32
    %c0_i32_0 = arith.constant 0 : i32
    return %arg1, %c0_i32 : i32, i32
  }
  func.func @transform_9(%arg0: i32, %arg1: i32) -> (i32, i32) {
    %c0_i32 = arith.constant 0 : i32
    %c0_i32_0 = arith.constant 0 : i32
    %c0_i32_1 = arith.constant 0 : i32
    return %c0_i32, %c0_i32_0 : i32, i32
  }
  func.func @transform_10(%arg0: i32, %arg1: i32) -> (i32, i32, i32) {
    %c0_i32 = arith.constant 0 : i32
    %c0_i32_0 = arith.constant 0 : i32
    %c0_i32_1 = arith.constant 0 : i32
    return %arg0, %c0_i32, %c0_i32_0 : i32, i32, i32
  }
}

</mosaic_0001>

<bundles_post_ra>
// kernel: channel_transformer_block_v2.2
= control target key start
LH: loop header
LB: loop body
LE: loop exit
PB: predicated region body
PF: predicated region fallthrough
CT: control target
= control target key end

     0   :  { %s893_s30 = smov 0   ;;  %s962_s0 = inlined_call_operand.vmem [shape: f32[16,16], index: 0, kind: input, shape index: {}]   ;;  %s963_s1 = inlined_call_operand.vmem [shape: f32[1,16], index: 1, kind: input, shape index: {}]   ;;  %s964_s2 = inlined_call_operand.vmem [shape: f32[1,16], index: 2, kind: input, shape index: {}]   ;;  %s965_s3 = inlined_call_operand.vmem [shape: bf16[16,8], index: 3, kind: input, shape index: {}]   ;;  %s966_s4 = inlined_call_operand.vmem [shape: f32[1,8], index: 4, kind: input, shape index: {}]   ;;  %s967_s5 = inlined_call_operand.vmem [shape: bf16[16,8], index: 5, kind: input, shape index: {}]   ;;  %s968_s6 = inlined_call_operand.vmem [shape: f32[1,8], index: 6, kind: input, shape index: {}]   ;;  %s969_s7 = inlined_call_operand.vmem [shape: bf16[16,16], index: 7, kind: input, shape index: {}]   ;;  %s970_s8 = inlined_call_operand.vmem [shape: f32[1,16], index: 8, kind: input, shape index: {}]   ;;  %s971_s9 = inlined_call_operand.vmem [shape: bf16[2,16,8], index: 9, kind: output, shape index: {}]  }
   0x1 LB: > { %s741_s10 = sadd.s32 4294967295, %s839_s30   ;;  %p745_p0 = scmp.ge.s32.totalorder %s839_s30, 1  ;;  %s839_s30 = sphi %s893_s30, %s19_s30  }
   0x2   : > { %p286_p1 = scmp.lt.s32.totalorder %s839_s30, 3 }
   0x4   : > { %p287_p2 = pnand %p745_p0, %p286_p1 }
   0x5   : > { %p321_p3 = scmp.lt.s32.totalorder (!%p287_p2), %s741_s10, 1  ;;  %vm334_vm0 = vcmask (!%p287_p2), 130048   ;;  %v820_v7 = vld [vmem:[%s965_s3] sm:$0xff] (!%p287_p2)   ;;  %v841_v9 = vmov (!%p287_p2), 0.0   ;;  %vm842_vm1 = vmmov (!%p287_p2), 0   ;;  %vm533_vm2 = vcmask (!%p287_p2), 64512  }
   0x6   : > { %290 = sbr.rel (%p287_p2) target bundleno = 1334 (0x536), region = 56  ;;  %v821_v8 = vld [vmem:[%s967_s5] sm:$0xff] (!%p287_p2)   ;;  %779 = vmatprep.subr.bf16.mxu0 (!%p287_p2), %v841_v9  ;;  %785 = vmatprep.subr.bf16.mxu1 (!%p287_p2), %v841_v9  ;;  %vm554_vm3 = vcmask (!%p287_p2), 125952   ;;  %vm549_vm4 = vcmask (!%p287_p2), 60416  }
   0x7   : > { %780 = vmatpush3.bf16.msra.mxu0 (!%p287_p2), %v820_v7  ;;  %786 = vmatpush3.bf16.msra.mxu1 (!%p287_p2), %v821_v8  ;;  %v749_v14 = vld [vmem:[%s963_s1] ss:$0 sm:$0xff] (!%p287_p2) }
   0x8   : > { %781 = vmatprep.mubr.msk.bf16.mxu0 (!%p287_p2), %vm842_vm1, %v841_v9  ;;  %787 = vmatprep.mubr.msk.bf16.mxu1 (!%p287_p2), %vm842_vm1, %v841_v9  ;;  %v750_v16 = vld [vmem:[%s964_s2] ss:$0 sm:$0xff] (!%p287_p2) }
   0x9   : > { %791 = vmatprep.subr.bf16.mxu0 (!%p287_p2), %v841_v9  ;;  %797 = vmatprep.subr.bf16.mxu1 (!%p287_p2), %v841_v9  ;;  %v822_v19 = vld [vmem:[%s969_s7] sm:$0xff] (!%p287_p2)  }
   0xa   : > { %v751_v21 = vld [vmem:[%s966_s4] ss:$0 sm:$0xff] (!%p287_p2) }
   0xb   : > { %v754_v22 = vld [vmem:[%s968_s6] ss:$0 sm:$0xff] (!%p287_p2) }
   0xc   : > { %v757_v36 = vld [vmem:[%s970_s8] ss:$0 sm:$0xff] (!%p287_p2) }
   0xd   : > { %s973_s10 = smov (!%p321_p3, %s741_s10), 1 }
   0xe   : > { %s746_s11 = sshll.u32 %s973_s10, 3 }
   0xf   : > { %s324_s14 = scalar_lea.vmem %s962_s0, %s746_s11  ;;  %s329_s15 = scalar_lea.vmem %s971_s9, %s746_s11 }
  0x10   : > { %v331_v0 = vld [vmem:[%s324_s14] sm:$0xff] }
  0x11   : > { %v335_v1 = vsel %vm334_vm0, %v331_v0, 0.0 }
  0x12   : > { %336 = vadd.xlane.f32.xlu0 %v335_v1 }
  0x9f   : > { %v337_v2 = vpop.xlane.xlu0 %336 }
  0xa0   : > { %v339_v3 = vmul.f32 0.0625, %v337_v2 }
  0xa2   : > { %v340_v4 = vsub.f32 %v331_v0, %v339_v3 }
  0xa4   : > { %v341_v5 = vmul.f32 %v340_v4, %v340_v4 }
  0xa6   : > { %v342_v6 = vsel %vm334_vm0, %v341_v5, 0.0 }
  0xa7   : > { %343 = vadd.xlane.f32.xlu0 %v342_v6 }
 0x134   : > { %v344_v10 = vpop.xlane.xlu0 %343 }
 0x135   : > { %v345_v11 = vmul.f32 0.0625, %v344_v10 }
 0x137   : > { %v346_v12 = vadd.f32 1e-05, %v345_v11 }
 0x139   : > { %823 = vrsqrt.f32 %v346_v12 }
 0x143   : > { %v824_v13 = vpop.eup %823 }
 0x144   : > { %v348_v15 = vmul.f32 %v824_v13, %v340_v4 }
 0x146   : > { %v355_v17 = vmul.f32 %v749_v14, %v348_v15 }
 0x148   : > { %v362_v18 = vadd.f32 %v750_v16, %v355_v17 }
 0x14a   : > { %v363_v20 = vpack.c.bf16 %v362_v18, %v362_v18 }
 0x14c   : > { %782 = vmatmul.mubr.msk.bf16.vlgmr.msra.gmra.mrb[0].mxu0 %vm334_vm0, %v363_v20  ;;  %788 = vmatmul.mubr.msk.bf16.vlgmr.msra.gmra.mrb[0].mxu1 %vm334_vm0, %v363_v20 }
 0x14d   : > { %792 = vmatpush3.bf16.msra.mxu0 %v822_v19  ;;  %793 = vmatprep.mubr.msk.bf16.mxu0 %vm842_vm1, %v841_v9 }
 0x14e   : > { %799 = vmatprep.mubr.msk.bf16.mxu1 %vm842_vm1, %v841_v9  ;;  %803 = vmatprep.subr.bf16.mxu0 %v841_v9 }
 0x154   : > { %794 = vmatmul.mubr.msk.bf16.vlgmr.msra.gmra.mrb[4].mxu0 %vm334_vm0, %v363_v20 }
 0x155   : > { %805 = vmatprep.mubr.msk.bf16.mxu0 %vm842_vm1, %v841_v9 }
 0x21f   : > { %v416_v23 = vpop.f32.mrb[0].mxu0  ;;  %v471_v24 = vpop.f32.mrb[0].mxu1 }
 0x220   : > { %v417_v25 = vadd.f32 %v751_v21, %v416_v23  ;;  %v472_v26 = vadd.f32 %v754_v22, %v471_v24  ;;  %v783_v27 = vpop.f32.mrb[1].mxu0  ;;  %v789_v28 = vpop.f32.mrb[1].mxu1 }
 0x221   : > { %v419_v29 = vpop.f32.mrb[2].mxu0  ;;  %v474_v30 = vpop.f32.mrb[2].mxu1 }
 0x222   : > { %v784_v31 = vpop.f32.mrb[3].mxu0  ;;  %v790_v32 = vpop.f32.mrb[3].mxu1  ;;  %v532_v33 = vmul.f32 %v417_v25, %v417_v25  ;;  %v541_v35 = vmul.f32 %v472_v26, %v472_v26 }
 0x224   : > { %v534_v34 = vsel %vm533_vm2, %v532_v33, 0.0  ;;  %v542_v40 = vsel %vm533_vm2, %v541_v35, 0.0 }
 0x225   : > { %535 = vadd.xlane.f32.xlu1 %v534_v34 }
 0x227   : > { %v526_v37 = vpop.f32.mrb[4].mxu0 }
 0x228   : > { %v527_v38 = vadd.f32 %v757_v36, %v526_v37  ;;  %v795_v39 = vpop.f32.mrb[5].mxu0 }
 0x229   : > { %543 = vadd.xlane.f32.xlu1 %v542_v40  ;;  %v529_v41 = vpop.f32.mrb[6].mxu0 }
 0x22a   : > { %v553_v42 = vpack.c.bf16 %v527_v38, %v527_v38  ;;  %v796_v43 = vpop.f32.mrb[7].mxu0 }
 0x22c   : > { %555 = vst.msk [vmem:[#allocation4] sm:$0xf] %vm554_vm3, %v553_v42 }
 0x233   : > { %v558_v44 = vld [vmem:[#allocation4] sm:$0xf] }
 0x256   : > { %613 = vxpose.xlu1.c.b16.start.end [1/1] (short) (narrow) %v558_v44, 16 }
 0x2b2   : > { %v536_v45 = vpop.xlane.xlu1 %535 }
 0x2b3   : > { %825 = vrsqrt.f32 %v536_v45 }
 0x2b6   : > { %v544_v46 = vpop.xlane.xlu1 %543 }
 0x2b7   : > { %827 = vrsqrt.f32 %v544_v46 }
 0x2bc   : > { %v621_v7 = vpop.trf.xlu1 }
 0x2bd   : > { %v826_v47 = vpop.eup %825 }
 0x2be   : > { %v538_v48 = vmin.f32 %v826_v47, 1e+12 }
 0x2c0   : > { %v539_v49 = vmul.f32 0.25, %v538_v48 }
 0x2c1   : > { %v828_v50 = vpop.eup %827 }
 0x2c2   : > { %v540_v51 = vmul.f32 %v539_v49, %v417_v25  ;;  %v546_v52 = vmin.f32 %v828_v50, 1e+12 }
 0x2c4   : > { %v548_v53 = vpack.c.bf16 %v540_v51, %v540_v51  ;;  %v547_v54 = vmul.f32 %v546_v52, %v472_v26 }
 0x2c6   : > { %550 = vst.msk [vmem:[#allocation2] sm:$0xf] %vm549_vm4, %v548_v53  ;;  %v551_v55 = vpack.c.bf16 %v547_v54, %v547_v54 }
 0x2c8   : > { %552 = vst.msk [vmem:[#allocation3] sm:$0xf] %vm549_vm4, %v551_v55 }
 0x2cd   : > { %v556_v56 = vld [vmem:[#allocation2] sm:$0xf] }
 0x2ce   : > { %v563_v57 = vsel %vm533_vm2, %v556_v56, 0 }
 0x2cf   : > { %798 = vmatpush3.bf16.xpose.msra.mxu1 %v563_v57  ;;  %v557_v58 = vld [vmem:[#allocation3] sm:$0xf] }
 0x2d6   : > { %800 = vmatmul.mubr.msk.bf16.vlgmr.msra.gmra.mrb[4].mxu1 %vm533_vm2, %v557_v58 }
 0x3a9   : > { %v599_v59 = vpop.f32.mrb[4].mxu1 }
 0x3aa   : > { %v605_v60 = vmul.f32 1.442695, %v599_v59  ;;  %v801_v61 = vpop.f32.mrb[5].mxu1 }
 0x3ab   : > { %v602_v62 = vpop.f32.mrb[6].mxu1 }
 0x3ac   : > { %829 = vpow2.f32 %v605_v60  ;;  %v802_v63 = vpop.f32.mrb[7].mxu1 }
 0x3b6   : > { %v830_v0 = vpop.eup %829 }
 0x3b7   : > { %v607_v1 = vsel %vm533_vm2, %v830_v0, 0.0 }
 0x3b8   : > { %608 = vadd.xlane.f32.xlu0 %v607_v1 }
 0x445   : > { %v609_v2 = vpop.xlane.xlu0 %608 }
 0x446   : > { %831 = vrcp.f32 %v609_v2 }
 0x450   : > { %v832_v3 = vpop.eup %831 }
 0x451   : > { %v611_v4 = vmul.f32 %v832_v3, %v830_v0 }
 0x453   : > { %v612_v5 = vpack.c.bf16 %v611_v4, %v611_v4 }
 0x455   : > { %v633_v6 = vsel %vm533_vm2, %v612_v5, 0 }
 0x456   : > { %804 = vmatpush3.bf16.xpose.msra.mxu0 %v633_v6 }
 0x45d   : > { %806 = vmatmul.mubr.msk.bf16.vlgmr.msra.gmra.mrb[8].mxu0 %vm533_vm2, %v621_v7 }
 0x530   : > { %v669_v8 = vpop.f32.mrb[8].mxu0 }
 0x531   : > { %v767_v9 = vpack.c.bf16 %v669_v8, %v669_v8  ;;  %v807_v10 = vpop.f32.mrb[9].mxu0 }
 0x532   : > { %v672_v11 = vpop.f32.mrb[10].mxu0 }
 0x533   : > { %684 = vst.msk [vmem:[%s329_s15] sm:$0xf] %vm549_vm4, %v767_v9  ;;  %v768_v12 = vpack.c.bf16 %v672_v11, %v672_v11  ;;  %v808_v13 = vpop.f32.mrb[11].mxu0 }
 0x535   : > { %685 = vst.msk [vmem:[%s329_s15 + $0x4] sm:$0xf] %vm549_vm4, %v768_v12 }
 0x536 PF: > { %s19_s30 = sadd.s32 1, %s839_s30  }
 0x537   : > { %p16_p4 = scmp.ge.s32.totalorder %s19_s30, 4  }
 0x539   :  { %18 = sbr.rel (!%p16_p4) target bundleno = 1 (0x1), region = 86 }

// kernel: channel_transformer_block_v2.3
= control target key start
LH: loop header
LB: loop body
LE: loop exit
PB: predicated region body
PF: predicated region fallthrough
CT: control target
= control target key end

     0   :  { %s1029_s13 = smov 0   ;;  %s1031_s14 = smov 0   ;;  %s1109_s0 = inlined_call_operand.vmem [shape: bf16[16,16], index: 0, kind: input, shape index: {}]   ;;  %s1110_s1 = inlined_call_operand.vmem [shape: f32[16,16], index: 1, kind: input, shape index: {}]   ;;  %s1111_s2 = inlined_call_operand.vmem [shape: bf16[16,16], index: 2, kind: input, shape index: {}]   ;;  %s1112_s3 = inlined_call_operand.vmem [shape: f32[1,16], index: 3, kind: input, shape index: {}]   ;;  %s1113_s4 = inlined_call_operand.vmem [shape: f32[1,16], index: 4, kind: input, shape index: {}]   ;;  %s1114_s5 = inlined_call_operand.vmem [shape: f32[1,16], index: 5, kind: input, shape index: {}]   ;;  %s1115_s6 = inlined_call_operand.vmem [shape: bf16[16,64], index: 6, kind: input, shape index: {}]   ;;  %s1116_s7 = inlined_call_operand.vmem [shape: f32[1,64], index: 7, kind: input, shape index: {}]   ;;  %s1117_s8 = inlined_call_operand.vmem [shape: bf16[64,16], index: 8, kind: input, shape index: {}]   ;;  %s1118_s9 = inlined_call_operand.vmem [shape: f32[1,16], index: 9, kind: input, shape index: {}]   ;;  %s1119_s10 = inlined_call_operand.vmem [shape: f32[2,16,8], index: 10, kind: output, shape index: {}]  }
   0x1   :  { %s1033_s15 = smov 0  }
   0x2 LB: > { %s32_s16 = sadd.s32 1, %s966_s14  ;;  %p857_p0 = scmp.ge.s32.totalorder %s970_s15, 1  ;;  %s970_s15 = sphi %s1033_s15, %s20_s15   ;;  %s966_s14 = sphi %s1031_s14, %s1121_s14   ;;  %s962_s13 = sphi %s1029_s13, %s1120_s13  }
   0x3   : > { %p34_p1 = scmp.ge.s32.totalorder %s32_s16, 2  ;;  %p360_p2 = scmp.lt.s32.totalorder %s970_s15, 3 }
   0x5   : > { %s1123_s16 = smov (%p34_p1, %s32_s16), 0  ;;  %p361_p3 = pnand %p857_p0, %p360_p2 }
   0x6   : > { %v938_v0 = vld [vmem:[%s1111_s2] sm:$0xff] (!%p361_p3)   ;;  %v972_v1 = vmov (!%p361_p3), 0.0   ;;  %p413_p4 = scmp.lt.s32.totalorder (!%p361_p3), %s962_s13, 1  ;;  %vm973_vm0 = vmmov (!%p361_p3), 0   ;;  %vm460_vm1 = vcmask (!%p361_p3), 130048   ;;  %vm537_vm2 = vcmask (!%p361_p3), 125952  }
   0x7   : > { %364 = sbr.rel (%p361_p3) target bundleno = 1146 (0x47a), region = 60  ;;  %888 = vmatprep.subr.bf16.mxu1 (!%p361_p3), %v972_v1  ;;  %900 = vmatprep.subr.bf16.mxu0 (!%p361_p3), %v972_v1  ;;  %v862_v3 = vld [vmem:[%s1112_s3] ss:$0 sm:$0xff] (!%p361_p3)  ;;  %v941_v32 = vld [vmem:[%s1117_s8 + $0x8] sm:$0xff] (!%p361_p3)   ;;  %v942_v33 = vld [vmem:[%s1117_s8 + $0x10] sm:$0xff] (!%p361_p3)   ;;  %vm647_vm3 = vcmask (!%p361_p3), 523264  }
   0x8   : > { %889 = vmatpush3.bf16.msra.mxu1 (!%p361_p3), %v938_v0  ;;  %890 = vmatprep.mubr.msk.bf16.mxu1 (!%p361_p3), %vm973_vm0, %v972_v1  ;;  %v867_v8 = vld [vmem:[%s1118_s9] ss:$0 sm:$0xff] (!%p361_p3)  ;;  %v943_v34 = vld [vmem:[%s1117_s8 + $0x18] sm:$0xff] (!%p361_p3)   ;;  %vm729_vm4 = vcmask (!%p361_p3), 64512  }
   0x9   : > { %894 = vmatprep.subr.bf16.mxu1 (!%p361_p3), %v972_v1  ;;  %908 = vmatprep.mubr.msk.bf16.mxu0 (!%p361_p3), %vm973_vm0, %v972_v1  ;;  %v939_v19 = vld [vmem:[%s1115_s6] sm:$0xff] (!%p361_p3)  }
   0xa   : > { %v865_v24 = vld [vmem:[%s1113_s4] ss:$0 sm:$0xff] (!%p361_p3) }
   0xb   : > { %v866_v26 = vld [vmem:[%s1114_s5] ss:$0 sm:$0xff] (!%p361_p3) }
   0xc   : > { %v940_v31 = vld [vmem:[%s1117_s8] sm:$0xff] (!%p361_p3)  }
   0xd   : > { %901 = vmatpush3.bf16.msra.mxu0 (!%p361_p3), %v940_v31  ;;  %v868_v35 = vld [vmem:[%s1116_s7] ss:$0 sm:$0xff] (!%p361_p3) }
   0xe   : > { %s1125_s13 = smov (!%p413_p4, %s962_s13), 1  ;;  %902 = vmatprep.subr.bf16.mxu0 %v972_v1 }
   0xf   : > { %s858_s19 = sshll.u32 %s1125_s13, 2  ;;  %s859_s23 = sshll.u32 %s1125_s13, 3 }
  0x10   : > { %s416_s22 = scalar_lea.vmem %s1109_s0, %s858_s19  ;;  %s420_s26 = scalar_lea.vmem %s1110_s1, %s859_s23 }
  0x11   : > { %v444_v2 = vld [vmem:[%s416_s22] sm:$0xf]  ;;  %903 = vmatpush3.bf16.msra.mxu0 %v941_v32  ;;  %s878_s11 = sshll.u32 %s1125_s13, 4 }
  0x12   : > { %891 = vmatmul.mubr.msk.bf16.vlgmr.msra.gmra.mrb[0].mxu1 %vm460_vm1, %v444_v2  ;;  %v504_v5 = vld [vmem:[%s420_s26] sm:$0xff]  ;;  %904 = vmatprep.subr.bf16.mxu0 %v972_v1  ;;  %s438_s18 = scalar_lea.vmem %s1119_s10, %s878_s11 }
  0x13   : > { %896 = vmatprep.mubr.msk.bf16.mxu1 %vm973_vm0, %v972_v1  ;;  %895 = vmatpush3.bf16.msra.mxu1 %v939_v19 }
  0x15   : > { %905 = vmatpush3.bf16.msra.mxu0 %v942_v33 }
  0x16   : > { %906 = vmatprep.subr.bf16.mxu0 %v972_v1 }
  0x19   : > { %907 = vmatpush3.bf16.msra.mxu0 %v943_v34 }
  0xe5   : > { %v498_v4 = vpop.f32.mrb[0].mxu1 }
  0xe6   : > { %v499_v6 = vadd.f32 %v862_v3, %v498_v4  ;;  %v892_v7 = vpop.f32.mrb[1].mxu1 }
  0xe7   : > { %v501_v9 = vpop.f32.mrb[2].mxu1 }
  0xe8   : > { %v505_v10 = vadd.f32 %v504_v5, %v499_v6  ;;  %v893_v11 = vpop.f32.mrb[3].mxu1 }
  0xea   : > { %v546_v12 = vadd.f32 %v867_v8, %v505_v10  ;;  %v508_v13 = vsel %vm460_vm1, %v505_v10, 0.0 }
  0xeb   : > { %509 = vadd.xlane.f32.xlu0 %v508_v13 }
  0xec   : > { %547 = vst.msk [vmem:[#allocation3] sm:$0xff] %vm460_vm1, %v546_v12 }
  0xf3   : > { %v613_v47 = vld [vmem:[#allocation3] sm:$0xff] }
 0x178   : > { %v510_v14 = vpop.xlane.xlu0 %509 }
 0x179   : > { %v512_v15 = vmul.f32 0.0625, %v510_v14 }
 0x17b   : > { %v513_v16 = vsub.f32 %v505_v10, %v512_v15 }
 0x17d   : > { %v514_v17 = vmul.f32 %v513_v16, %v513_v16 }
 0x17f   : > { %v515_v18 = vsel %vm460_vm1, %v514_v17, 0.0 }
 0x180   : > { %516 = vadd.xlane.f32.xlu0 %v515_v18 }
 0x20d   : > { %v517_v20 = vpop.xlane.xlu0 %516 }
 0x20e   : > { %v518_v21 = vmul.f32 0.0625, %v517_v20 }
 0x210   : > { %v519_v22 = vadd.f32 1e-05, %v518_v21 }
 0x212   : > { %944 = vrsqrt.f32 %v519_v22 }
 0x21c   : > { %v945_v23 = vpop.eup %944 }
 0x21d   : > { %v521_v25 = vmul.f32 %v945_v23, %v513_v16 }
 0x21f   : > { %v528_v27 = vmul.f32 %v865_v24, %v521_v25 }
 0x221   : > { %v535_v28 = vadd.f32 %v866_v26, %v528_v27 }
 0x223   : > { %v536_v29 = vpack.c.bf16 %v535_v28, %v535_v28 }
 0x225   : > { %538 = vst.msk [vmem:[#allocation2] sm:$0xf] %vm537_vm2, %v536_v29 }
 0x22c   : > { %v548_v30 = vld [vmem:[#allocation2] sm:$0xf] }
 0x22d   : > { %897 = vmatmul.mubr.msk.bf16.vlgmr.msra.gmra.mrb[4].mxu1 %vm460_vm1, %v548_v30 }
 0x300   : > { %v602_v36 = vpop.f32.mrb[4].mxu1 }
 0x301   : > { %v603_v37 = vadd.f32 %v868_v35, %v602_v36  ;;  %v898_v38 = vpop.f32.mrb[5].mxu1 }
 0x302   : > { %v605_v39 = vpop.f32.mrb[6].mxu1 }
 0x303   : > { %v609_v40 = vmul.f32 0.70710677, %v603_v37  ;;  %v899_v41 = vpop.f32.mrb[7].mxu1  ;;  %v608_v43 = vmul.f32 0.5, %v603_v37 }
 0x305   : > { %946 = verf.f32 %v609_v40 }
 0x30f   : > { %v947_v42 = vpop.eup %946 }
 0x310   : > { %v611_v44 = vadd.f32 1.0, %v947_v42 }
 0x312   : > { %v612_v45 = vmul.f32 %v611_v44, %v608_v43 }
 0x314   : > { %v614_v46 = vpack.c.bf16 %v612_v45, %v612_v45 }
 0x316   : > { %909 = vmatmul.mubr.msk.bf16.vlgmr.msra.gmra.mrb[0].mxu0 %vm647_vm3, %v614_v46 }
 0x3e9   : > { %v685_v48 = vpop.f32.mrb[0].mxu0 }
 0x3ea   : > { %v691_v49 = vadd.f32 %v685_v48, %v613_v47  ;;  %v910_v50 = vpop.f32.mrb[1].mxu0 }
 0x3eb   : > { %v688_v51 = vpop.f32.mrb[2].mxu0 }
 0x3ec   : > { %692 = vst.msk [vmem:[#allocation3] sm:$0xff] %vm460_vm1, %v691_v49  ;;  %v911_v52 = vpop.f32.mrb[3].mxu0 }
 0x3f3   : > { %v696_v53 = vld [vmem:[#allocation3] sm:$0xff] }
 0x3f4   : > { %697 = vxpose.xlu1.b32.start.end [1/1] (short) (narrow) %v696_v53, 16 }
 0x474   : > { %v713_v54 = vpop.trf.xlu1 }
 0x475   : > { %730 = vst.msk [vmem:[%s438_s18] sm:$0xff] %vm729_vm4, %v713_v54 }
 0x478   : > { %v714_v55 = vpop.trf.xlu1 }
 0x479   : > { %731 = vst.msk [vmem:[%s438_s18 + $0x8] sm:$0xff] %vm729_vm4, %v714_v55 }
 0x47a PF: > { %s20_s15 = sadd.s32 1, %s970_s15   ;;  %s1120_s13 = smov %s966_s14 }
 0x47b   : > { %p17_p5 = scmp.ge.s32.totalorder %s20_s15, 4   ;;  %s1121_s14 = smov %s1123_s16 }
 0x47d   :  { %19 = sbr.rel (!%p17_p5) target bundleno = 2 (0x2), region = 110 }

</bundles_post_ra>
